<compile_context>
chip_gen: v7x
topology: tpu7x:2x2x1
jax: 0.10.0
libtpu: 0.0.40
codegen_flags: <defaults>
</compile_context>

<pallas_src>
import functools

import jax
import jax.numpy as jnp
from jax.experimental import pallas as pl
from jax.experimental.pallas import tpu as pltpu


def _bert_emb_kernel(ids_ref,                 # SMEM (B*S,) int32   (scalar prefetch)
                     tt_ref,                  # VMEM (TM, 1) int32
                     word_hbm,                # HBM  (V, D)  (memory_space=pl.ANY)
                     pos_ref,                 # VMEM (S, D)  rows 0..S-1
                     type_ref,                # VMEM (T, D)
                     gamma_ref, beta_ref,     # VMEM (1, D)
                     out_ref,                 # VMEM (TM, D)
                     gather_buf, sem,         # scratch: VMEM (TM, D), DMA sem
                     *, eps):
    TM, D = out_ref.shape
    S = pos_ref.shape[0]
    T = type_ref.shape[0]
    reps = TM // S                            # static: tile covers `reps` sequences
    row0 = pl.program_id(0) * TM

    # ---- word embeddings: per-row DMA gather HBM -> VMEM (replaces one-hot MXU matmul) ----
    @pl.loop(0, TM)
    def _issue(r):
        wid = ids_ref[row0 + r]
        pltpu.make_async_copy(
            word_hbm.at[pl.ds(wid, 1), :],
            gather_buf.at[pl.ds(r, 1), :],
            sem,
        ).start()

    @pl.loop(0, TM)
    def _drain(r):
        # all row copies are the same size, so waiting TM times on the shared sem drains them
        pltpu.make_async_copy(
            word_hbm.at[pl.ds(0, 1), :],
            gather_buf.at[pl.ds(0, 1), :],
            sem,
        ).wait()

    emb = gather_buf[...].astype(jnp.float32)

    # ---- position embeddings: tiles are sequence-aligned, so just tile rows 0..S-1 ----
    pos = pos_ref[...].astype(jnp.float32)
    if reps > 1:
        pos = jnp.tile(pos, (reps, 1))
    emb = emb + pos

    # ---- token type embeddings: VPU select over the tiny type vocab (no MXU) ----
    tts = tt_ref[...]                                   # (TM, 1) int32
    t_emb = jnp.zeros((TM, D), jnp.float32)
    for t in range(T):                                  # T is tiny (2 for BERT)
        row = type_ref[t:t + 1, :].astype(jnp.float32)  # (1, D)
        t_emb = jnp.where(tts == t, row, t_emb)
    emb = emb + t_emb

    # ---- LayerNorm over D (biased variance, eps inside rsqrt — matches torch) ----
    mean = jnp.mean(emb, axis=-1, keepdims=True)
    cent = emb - mean
    var = jnp.mean(cent * cent, axis=-1, keepdims=True)
    normed = cent * jax.lax.rsqrt(var + eps)
    out_ref[...] = (normed * gamma_ref[...] + beta_ref[...]).astype(out_ref.dtype)
    # dropout: eval-mode identity


def _pick_tile_rows(batch, seq_len, target_rows=512):
    """Largest whole-sequence row tile <= target_rows, preferring >= 2 grid steps (megacore)."""
    divisors = [k for k in range(1, batch + 1) if batch % k == 0]
    fitting = [k for k in divisors if k * seq_len <= target_rows] or [1]
    multi = [k for k in fitting if batch // k >= 2]
    k = max(multi) if multi else max(fitting)
    return k * seq_len


def bert_embeddings(input_ids, token_type_ids, word_tbl, pos_tbl, type_tbl,
                    gamma, beta, *, eps=1e-12, tile_rows=None):
    B, S = input_ids.shape
    V, D = word_tbl.shape
    T = type_tbl.shape[0]
    BS = B * S

    if token_type_ids is None:
        token_type_ids = jnp.zeros_like(input_ids)

    if tile_rows is None:
        tile_rows = _pick_tile_rows(B, S)
    assert tile_rows % S == 0 and BS % tile_rows == 0, "tile must cover whole sequences"
    assert tile_rows % 8 == 0 or tile_rows == BS, "tile rows must be sublane-aligned"
    assert S % 8 == 0 or S == pos_tbl.shape[0], "position slab must be sublane-aligned"

    ids_flat = input_ids.reshape(BS).astype(jnp.int32)         # scalar-prefetch (SMEM)
    tt_flat = token_type_ids.reshape(BS, 1).astype(jnp.int32)
    gamma2 = gamma.reshape(1, D).astype(jnp.float32)
    beta2 = beta.reshape(1, D).astype(jnp.float32)

    kernel = functools.partial(_bert_emb_kernel, eps=eps)

    out_flat = pl.pallas_call(
        kernel,
        out_shape=jax.ShapeDtypeStruct((BS, D), jnp.float32),
        grid_spec=pltpu.PrefetchScalarGridSpec(
            num_scalar_prefetch=1,
            grid=(BS // tile_rows,),
            in_specs=[
                pl.BlockSpec((tile_rows, 1), lambda i, ids: (i, 0)),   # token types
                pl.BlockSpec(memory_space=pl.ANY),                     # word table (stays in HBM)
                pl.BlockSpec((S, D), lambda i, ids: (0, 0)),           # position rows 0..S-1
                pl.BlockSpec((T, D), lambda i, ids: (0, 0)),           # type table (tiny)
                pl.BlockSpec((1, D), lambda i, ids: (0, 0)),           # gamma
                pl.BlockSpec((1, D), lambda i, ids: (0, 0)),           # beta
            ],
            out_specs=pl.BlockSpec((tile_rows, D), lambda i, ids: (i, 0)),
            scratch_shapes=[
                pltpu.VMEM((tile_rows, D), jnp.float32),   # gathered word-embedding rows
                pltpu.SemaphoreType.DMA(()),               # shared gather DMA semaphore
            ],
        ),
        compiler_params=pltpu.CompilerParams(
            dimension_semantics=("parallel",),
            vmem_limit_bytes=64 * 1024 * 1024,
        ),
    )(ids_flat, tt_flat,
      word_tbl.astype(jnp.float32), pos_tbl.astype(jnp.float32),
      type_tbl.astype(jnp.float32), gamma2, beta2)

    return out_flat.reshape(B, S, D)


def _reference(input_ids, token_type_ids, word_tbl, pos_tbl, type_tbl, gamma, beta, eps):
    B, S = input_ids.shape
    w = word_tbl[input_ids]
    p = jnp.broadcast_to(pos_tbl[jnp.arange(S)][None, :, :], w.shape)
    t = type_tbl[token_type_ids]
    emb = w + p + t
    mean = jnp.mean(emb, axis=-1, keepdims=True)
    var = jnp.mean((emb - mean) ** 2, axis=-1, keepdims=True)
    normed = (emb - mean) / jnp.sqrt(var + eps)
    return normed * gamma + beta


if __name__ == "__main__":
    # Small config consistent with BertEmbeddings.__init__
    VOCAB_SIZE = 64
    MAX_POS = 32
    TYPE_VOCAB = 2
    EMB_DIM = 32
    PAD_TOKEN_ID = 0
    EPS = 1e-12
    B, S = 2, 8

    key = jax.random.PRNGKey(0)
    k_w, k_p, k_t, k_ids, k_tt = jax.random.split(key, 5)

    word_tbl = 0.02 * jax.random.normal(k_w, (VOCAB_SIZE, EMB_DIM), jnp.float32)
    word_tbl = word_tbl.at[PAD_TOKEN_ID].set(0.0)   # padding_idx row is zero
    pos_tbl = 0.02 * jax.random.normal(k_p, (MAX_POS, EMB_DIM), jnp.float32)
    type_tbl = 0.02 * jax.random.normal(k_t, (TYPE_VOCAB, EMB_DIM), jnp.float32)
    gamma = jnp.ones((EMB_DIM,), jnp.float32)
    beta = jnp.zeros((EMB_DIM,), jnp.float32)

    input_ids = jax.random.randint(k_ids, (B, S), 0, VOCAB_SIZE, dtype=jnp.int32)
    token_type_ids = jax.random.randint(k_tt, (B, S), 0, TYPE_VOCAB, dtype=jnp.int32)

    out = bert_embeddings(input_ids, token_type_ids, word_tbl, pos_tbl, type_tbl,
                          gamma, beta, eps=EPS)
    out = jax.block_until_ready(out)

    ref = _reference(input_ids, token_type_ids, word_tbl, pos_tbl, type_tbl,
                     gamma, beta, EPS)
    assert out.shape == (B, S, EMB_DIM)
    assert jnp.allclose(out, ref, rtol=1e-5, atol=1e-5), "mismatch vs reference"

    print("KERNEL_OK")
</pallas_src>

<mosaic_0001>
module attributes {stable_mosaic.version = 11 : i64} {
  func.func @_bert_emb_kernel(%arg0: i32, %arg1: memref<16xi32, #tpu.memory_space<smem>>, %arg2: memref<8x1xi32, #tpu.memory_space<vmem>>, %arg3: memref<64x32xf32, #tpu.memory_space<any>>, %arg4: memref<8x32xf32, #tpu.memory_space<vmem>>, %arg5: memref<2x32xf32, #tpu.memory_space<vmem>>, %arg6: memref<1x32xf32, #tpu.memory_space<vmem>>, %arg7: memref<1x32xf32, #tpu.memory_space<vmem>>, %arg8: memref<8x32xf32, #tpu.memory_space<vmem>>, %arg9: memref<8x32xf32, #tpu.memory_space<vmem>>, %arg10: memref<!tpu.dma_semaphore, #tpu.memory_space<semaphore_mem>>) attributes {dimension_semantics = [#tpu.dimension_semantics<parallel>], iteration_bounds = array<i64: 2>, scalar_prefetch = 1 : i64, scratch_operands = 2 : i64, tpu.core_type = #tpu.core_type<tc>, window_params = [{transform_indices = @transform_0, window_bounds = array<i64: 8, 1>}, {}, {transform_indices = @transform_2, window_bounds = array<i64: 8, 32>}, {pipeline_mode = #tpu.pipeline_mode<synchronous>, transform_indices = @transform_3, window_bounds = array<i64: 2, 32>}, {pipeline_mode = #tpu.pipeline_mode<synchronous>, transform_indices = @transform_4, window_bounds = array<i64: 1, 32>}, {pipeline_mode = #tpu.pipeline_mode<synchronous>, transform_indices = @transform_5, window_bounds = array<i64: 1, 32>}, {transform_indices = @transform_6, window_bounds = array<i64: 8, 32>}]} {
    %c8_i32 = arith.constant 8 : i32
    %0 = arith.muli %arg0, %c8_i32 : i32
    %c0_i32 = arith.constant 0 : i32
    %c8_i32_0 = arith.constant 8 : i32
    %1 = arith.addi %c0_i32, %c8_i32_0 : i32
    %c1_i32 = arith.constant 1 : i32
    scf.for %arg11 = %c0_i32 to %1 step %c1_i32  : i32 {
      %c1_i32_26 = arith.constant 1 : i32
      %48 = arith.muli %arg11, %c1_i32_26 : i32
      %c0_i32_27 = arith.constant 0 : i32
      %49 = arith.addi %c0_i32_27, %48 : i32
      %50 = arith.addi %0, %49 : i32
      %51 = arith.index_cast %50 : i32 to index
      %52 = memref.load %arg1[%51] : memref<16xi32, #tpu.memory_space<smem>>
      %c0_i32_28 = arith.constant 0 : i32
      %53 = tpu.memref_slice %arg3[%52, %c0_i32_28] : memref<64x32xf32, #tpu.memory_space<any>> -> memref<1x32xf32, #tpu.memory_space<any>>
      %c0_i32_29 = arith.constant 0 : i32
      %54 = tpu.memref_slice %arg9[%49, %c0_i32_29] : memref<8x32xf32, #tpu.memory_space<vmem>> -> memref<1x32xf32, #tpu.memory_space<vmem>>
      tpu.enqueue_dma source(%53 : memref<1x32xf32, #tpu.memory_space<any>>) target(%54 : memref<1x32xf32, #tpu.memory_space<vmem>>) target_semaphore(%arg10 : memref<!tpu.dma_semaphore, #tpu.memory_space<semaphore_mem>>)
    }
    %c8_i32_1 = arith.constant 8 : i32
    %c0_i32_2 = arith.constant 0 : i32
    %c8_i32_3 = arith.constant 8 : i32
    %2 = arith.addi %c0_i32_2, %c8_i32_3 : i32
    %c1_i32_4 = arith.constant 1 : i32
    scf.for %arg11 = %c0_i32_2 to %2 step %c1_i32_4  : i32 {
      %c0_i32_26 = arith.constant 0 : i32
      %c0_i32_27 = arith.constant 0 : i32
      %48 = tpu.memref_slice %arg3[%c0_i32_26, %c0_i32_27] : memref<64x32xf32, #tpu.memory_space<any>> -> memref<1x32xf32, #tpu.memory_space<any>>
      %c0_i32_28 = arith.constant 0 : i32
      %c0_i32_29 = arith.constant 0 : i32
      %49 = tpu.memref_slice %arg9[%c0_i32_28, %c0_i32_29] : memref<8x32xf32, #tpu.memory_space<vmem>> -> memref<1x32xf32, #tpu.memory_space<vmem>>
      tpu.wait_dma2 semaphore(%arg10 : memref<!tpu.dma_semaphore, #tpu.memory_space<semaphore_mem>>) src(%48 : memref<1x32xf32, #tpu.memory_space<any>>) dst(%49 : memref<1x32xf32, #tpu.memory_space<vmem>>)
    }
    %c0 = arith.constant 0 : index
    %c0_5 = arith.constant 0 : index
    %3 = vector.load %arg9[%c0, %c0_5] : memref<8x32xf32, #tpu.memory_space<vmem>>, vector<8x32xf32>
    %c0_6 = arith.constant 0 : index
    %c0_7 = arith.constant 0 : index
    %4 = vector.load %arg4[%c0_6, %c0_7] : memref<8x32xf32, #tpu.memory_space<vmem>>, vector<8x32xf32>
    %5 = arith.addf %3, %4 : vector<8x32xf32>
    %c0_8 = arith.constant 0 : index
    %c0_9 = arith.constant 0 : index
    %6 = vector.load %arg2[%c0_8, %c0_9] : memref<8x1xi32, #tpu.memory_space<vmem>>, vector<8x1xi32>
    %cst = arith.constant 0.000000e+00 : f32
    %7 = vector.broadcast %cst : f32 to vector<8x32xf32>
    %c0_10 = arith.constant 0 : index
    %c0_11 = arith.constant 0 : index
    %8 = vector.load %arg5[%c0_10, %c0_11] : memref<2x32xf32, #tpu.memory_space<vmem>>, vector<1x32xf32>
    %c0_i32_12 = arith.constant 0 : i32
    %9 = vector.broadcast %c0_i32_12 : i32 to vector<8x1xi32>
    %10 = arith.cmpi eq, %6, %9 : vector<8x1xi32>
    %11 = vector.shape_cast %10 : vector<8x1xi1> to vector<8x1xi1>
    %12 = vector.broadcast %11 : vector<8x1xi1> to vector<8x32xi1>
    %13 = vector.shape_cast %8 : vector<1x32xf32> to vector<1x32xf32>
    %14 = vector.broadcast %13 : vector<1x32xf32> to vector<8x32xf32>
    %15 = arith.select %12, %14, %7 : vector<8x32xi1>, vector<8x32xf32>
    %c1 = arith.constant 1 : index
    %c0_13 = arith.constant 0 : index
    %16 = vector.load %arg5[%c1, %c0_13] : memref<2x32xf32, #tpu.memory_space<vmem>>, vector<1x32xf32>
    %c1_i32_14 = arith.constant 1 : i32
    %17 = vector.broadcast %c1_i32_14 : i32 to vector<8x1xi32>
    %18 = arith.cmpi eq, %6, %17 : vector<8x1xi32>
    %19 = vector.shape_cast %18 : vector<8x1xi1> to vector<8x1xi1>
    %20 = vector.broadcast %19 : vector<8x1xi1> to vector<8x32xi1>
    %21 = vector.shape_cast %16 : vector<1x32xf32> to vector<1x32xf32>
    %22 = vector.broadcast %21 : vector<1x32xf32> to vector<8x32xf32>
    %23 = arith.select %20, %22, %15 : vector<8x32xi1>, vector<8x32xf32>
    %24 = arith.addf %5, %23 : vector<8x32xf32>
    %cst_15 = arith.constant dense<0.000000e+00> : vector<8xf32>
    %25 = vector.multi_reduction <add>, %24, %cst_15 [1] : vector<8x32xf32> to vector<8xf32>
    %26 = vector.shape_cast %25 : vector<8xf32> to vector<8x1xf32>
    %cst_16 = arith.constant 3.200000e+01 : f32
    %27 = vector.broadcast %cst_16 : f32 to vector<8x1xf32>
    %28 = arith.divf %26, %27 : vector<8x1xf32>
    %29 = vector.broadcast %28 : vector<8x1xf32> to vector<8x32xf32>
    %30 = arith.subf %24, %29 : vector<8x32xf32>
    %31 = arith.mulf %30, %30 : vector<8x32xf32>
    %cst_17 = arith.constant dense<0.000000e+00> : vector<8xf32>
    %32 = vector.multi_reduction <add>, %31, %cst_17 [1] : vector<8x32xf32> to vector<8xf32>
    %33 = vector.shape_cast %32 : vector<8xf32> to vector<8x1xf32>
    %cst_18 = arith.constant 3.200000e+01 : f32
    %34 = vector.broadcast %cst_18 : f32 to vector<8x1xf32>
    %35 = arith.divf %33, %34 : vector<8x1xf32>
    %cst_19 = arith.constant 9.99999996E-13 : f32
    %36 = vector.broadcast %cst_19 : f32 to vector<8x1xf32>
    %37 = arith.addf %35, %36 : vector<8x1xf32>
    %38 = math.rsqrt %37 : vector<8x1xf32>
    %39 = vector.broadcast %38 : vector<8x1xf32> to vector<8x32xf32>
    %40 = arith.mulf %30, %39 : vector<8x32xf32>
    %c0_20 = arith.constant 0 : index
    %c0_21 = arith.constant 0 : index
    %41 = vector.load %arg6[%c0_20, %c0_21] : memref<1x32xf32, #tpu.memory_space<vmem>>, vector<1x32xf32>
    %42 = vector.broadcast %41 : vector<1x32xf32> to vector<8x32xf32>
    %43 = arith.mulf %40, %42 : vector<8x32xf32>
    %c0_22 = arith.constant 0 : index
    %c0_23 = arith.constant 0 : index
    %44 = vector.load %arg7[%c0_22, %c0_23] : memref<1x32xf32, #tpu.memory_space<vmem>>, vector<1x32xf32>
    %45 = vector.broadcast %44 : vector<1x32xf32> to vector<8x32xf32>
    %46 = arith.addf %43, %45 : vector<8x32xf32>
    %c0_24 = arith.constant 0 : index
    %c0_25 = arith.constant 0 : index
    %47 = vector.load %arg8[%c0_24, %c0_25] : memref<8x32xf32, #tpu.memory_space<vmem>>, vector<8x32xf32>
    tpu.vector_store %arg8[%c0_24, %c0_25], %46 {strides = array<i32>} : memref<8x32xf32, #tpu.memory_space<vmem>>, vector<8x32xf32>,
    return
  }
  func.func @transform_0(%arg0: i32, %arg1: memref<16xi32, #tpu.memory_space<smem>>) -> (i32, i32) {
    %c0_i32 = arith.constant 0 : i32
    %c0_i32_0 = arith.constant 0 : i32
    return %arg0, %c0_i32 : i32, i32
  }
  func.func @transform_2(%arg0: i32, %arg1: memref<16xi32, #tpu.memory_space<smem>>) -> (i32, i32) {
    %c0_i32 = arith.constant 0 : i32
    %c0_i32_0 = arith.constant 0 : i32
    %c0_i32_1 = arith.constant 0 : i32
    return %c0_i32, %c0_i32_0 : i32, i32
  }
  func.func @transform_3(%arg0: i32, %arg1: memref<16xi32, #tpu.memory_space<smem>>) -> (i32, i32) {
    %c0_i32 = arith.constant 0 : i32
    %c0_i32_0 = arith.constant 0 : i32
    %c0_i32_1 = arith.constant 0 : i32
    return %c0_i32, %c0_i32_0 : i32, i32
  }
  func.func @transform_4(%arg0: i32, %arg1: memref<16xi32, #tpu.memory_space<smem>>) -> (i32, i32) {
    %c0_i32 = arith.constant 0 : i32
    %c0_i32_0 = arith.constant 0 : i32
    %c0_i32_1 = arith.constant 0 : i32
    return %c0_i32, %c0_i32_0 : i32, i32
  }
  func.func @transform_5(%arg0: i32, %arg1: memref<16xi32, #tpu.memory_space<smem>>) -> (i32, i32) {
    %c0_i32 = arith.constant 0 : i32
    %c0_i32_0 = arith.constant 0 : i32
    %c0_i32_1 = arith.constant 0 : i32
    return %c0_i32, %c0_i32_0 : i32, i32
  }
  func.func @transform_6(%arg0: i32, %arg1: memref<16xi32, #tpu.memory_space<smem>>) -> (i32, i32) {
    %c0_i32 = arith.constant 0 : i32
    %c0_i32_0 = arith.constant 0 : i32
    return %arg0, %c0_i32 : i32, i32
  }
}

</mosaic_0001>

<bundles_post_ra>
// kernel: tpu_custom_call.1
= control target key start
LH: loop header
LB: loop body
LE: loop exit
PB: predicated region body
PF: predicated region fallthrough
CT: control target
= control target key end

     0   :  { %s1317_s0 = inlined_call_operand.hbm [shape: s32[16], index: 0, kind: input, shape index: {}]   ;;  %s1318_s1 = inlined_call_operand.hbm [shape: s32[16,1], index: 1, kind: input, shape index: {}]   ;;  %s1319_s2 = inlined_call_operand.hbm [shape: f32[64,32], index: 2, kind: input, shape index: {}]   ;;  %s1320_s3 = inlined_call_operand.hbm [shape: f32[32,32], index: 3, kind: input, shape index: {}]   ;;  %s1321_s4 = inlined_call_operand.hbm [shape: f32[2,32], index: 4, kind: input, shape index: {}]   ;;  %s1322_s5 = inlined_call_operand.hbm [shape: f32[1,32], index: 5, kind: input, shape index: {}]   ;;  %s1323_s6 = inlined_call_operand.hbm [shape: f32[1,32], index: 6, kind: input, shape index: {}]   ;;  %s1324_s7 = inlined_call_operand.hbm [shape: f32[16,32], index: 7, kind: output, shape index: {}]  }
   0x1   :  { %1328 = sst [smem:[#allocation26_spill]] %s1318_s1  ;;  %s665_s26 = scalar_lea.hbm %s1317_s0, 16 }
   0x2   :  { %1329 = sst [smem:[#allocation27_spill]] %s1320_s3  ;;  %p666_p0 = scmp.ne.s32.totalorder %s1317_s0, %s665_s26 }
   0x3   :  { %1330 = sst [smem:[#allocation28_spill]] %s1321_s4  ;;  %p669_p1 = scmp.lt.u32.totalorder %s665_s26, %s1317_s0 }
   0x4   :  { %1331 = sst [smem:[#allocation29_spill]] %s1322_s5 }
   0x5   :  { %p671_p2 = pnand %p669_p1, %p666_p0 }
   0x7   :  { %674 = shalt.err (!%p671_p2)  }
   0x8   :  { %s937_s8 = smov [#allocation5]  }
   0x9   :  { %13 = dma.hbm_to_smem %s1317_s0, 16, %s937_s8, [#allocation4] }
   0xa   :  { %893 = dma.done.wait [#allocation4], 16 }
   0xb   :  { %894 = vsyncadd [#allocation4], 4294967280 }
   0xc   :  { %15 = sfence }
   0xd   :  { %16 = vsyncpa [#allocation7], 0 }
   0xe   :  { %18 = vsyncpa [#allocation7 + $0x1], 0 }
   0xf   :  { %19 = vsyncpa [#allocation10], 0 }
  0x10   :  { %20 = vsyncpa [#allocation13], 0 }
  0x11   :  { %21 = vsyncpa [#allocation8], 0 }
  0x12   :  { %23 = vsyncpa [#allocation8 + $0x1], 0  ;;  %s998_s11 = smov 0   ;;  %s1000_s12 = smov 0  }
  0x13   :  { %s1002_s13 = smov 0   ;;  %s1004_s14 = smov 0  }
  0x14 LB: > { %s938_s0 = smov [#allocation9]   ;;  %s1019_s16 = sadd.s32 4294967295, %s927_s14   ;;  %s927_s14 = sphi %s1004_s14, %s1356_s14   ;;  %s923_s13 = sphi %s1002_s13, %s1355_s13   ;;  %s919_s12 = sphi %s1000_s12, %s1354_s12   ;;  %s915_s11 = sphi %s998_s11, %s1353_s11  }
  0x15   : > { %s183_s15 = sshll.u32 %s938_s0, 4  ;;  %p531_p3 = scmp.ge.s32.totalorder %s927_s14, 1  ;;  %s1024_s15 = int_to_ptr.vmem [resolvable:$true] %s183_s15 }
  0x16   : > { %p1325_p4 = scmp.eq.s32.totalorder %s1019_s16, 0  ;;  %p170_p5 = scmp.lt.s32.totalorder %s927_s14, 3 }
  0x17   : > { %s939_s18 = smov [#allocation12]   ;;  %s940_s20 = smov [#allocation11]  }
  0x18   : > { %p1026_p6 = pnand %p531_p3, %p170_p5  ;;  %s205_s19 = sshll.u32 %s939_s18, 4  ;;  %s1033_s19 = int_to_ptr.vmem [resolvable:$true] %s205_s19 }
  0x19   : > { %s194_s21 = sshll.u32 %s940_s20, 4  ;;  %s941_s23 = smov [#allocation14]   ;;  %s1041_s21 = int_to_ptr.vmem [resolvable:$true] %s194_s21 }
  0x1a   : > { %s1332_s17 = scalar_select %p1026_p6, 1, 0 }
  0x1b   : > { %p577_p8 = pneg %p1026_p6  ;;  %s1043_s24 = sshll.u32 %s941_s23, 4  ;;  %s217_s24 = int_to_ptr.vmem [resolvable:$true] %s1043_s24 }
  0x1c   : > { %s1334_s3 = sld [smem:[#allocation27_spill]] }
  0x1d   : > { %p1037_p9 = pnand %p577_p8, %p1325_p4 }
  0x1f   : > { %p1053_p11 = pneg %p1037_p9 }
  0x22   : > { %s675_s27 = scalar_lea.hbm %s1334_s3, 128  ;;  %s680_s10 = scalar_lea.hbm %s1334_s3, 512 }
  0x23   : > { %p676_p10 = scmp.ne.s32.totalorder %s1334_s3, %s675_s27  ;;  %p681_p0 = scmp.lt.u32.totalorder %s680_s10, %s675_s27 }
  0x24   : > { %p682_p1 = scmp.lt.u32.totalorder %s675_s27, %s1334_s3 }
  0x25   : > { %p678_p12 = pnand %p1053_p11, %p676_p10 }
  0x26   : > { %p683_p2 = por %p682_p1, %p681_p0 }
  0x27   : > { %p679_p13 = pneg %p678_p12 }
  0x29   : > { %p684_p3 = pnand %p683_p2, %p679_p13 }
  0x2b   : > { %687 = shalt.err (!%p684_p3)
}
  0x2c   : > { %s688_s20 = scalar_lea.vmem %s1024_s15, 128  ;;  %p696_p12 = scmp.lt.s32.totalorder %s1024_s15, %s1024_s15 }
  0x2d   : > { %p689_p5 = scmp.ne.s32.totalorder %s1024_s15, %s688_s20  ;;  %p697_p7 = scmp.lt.s32.totalorder %s688_s20, %s688_s20 }
  0x2f   : > { %p691_p8 = pnand %p689_p5, %p1053_p11  ;;  %p698_p4 = por %p697_p7, %p696_p12 }
  0x31   : > { %p692_p10 = pneg %p691_p8 }
  0x33   : > { %p699_p6 = pnand %p698_p4, %p692_p10 }
  0x35   : > { %702 = shalt.err (!%p699_p6)
}
  0x36   : > { %580 = dma.hbm_to_vmem [thread:$0]  (!%p1037_p9), %s1334_s3, 128, %s1024_s15, [#allocation10]  }
  0x37   : > { %s1336_s5 = sld [smem:[#allocation29_spill]] }
  0x3d   : > { %s703_s28 = scalar_lea.hbm %s1336_s5, 16 }
  0x3e   : > { %p704_p13 = scmp.ne.s32.totalorder %s1336_s5, %s703_s28  ;;  %p710_p6 = scmp.lt.u32.totalorder %s703_s28, %s1336_s5 }
  0x40   : > { %p706_p7 = pnand %p704_p13, %p1053_p11 }
  0x42   : > { %p707_p4 = pneg %p706_p7 }
  0x44   : > { %p712_p0 = pnand %p710_p6, %p707_p4 }
  0x46   : > { %715 = shalt.err (!%p712_p0)
}
  0x47   : > { %s716_s15 = scalar_lea.vmem %s1033_s19, 16  ;;  %s723_s0 = scalar_lea.vmem %s1033_s19, 32 }
  0x48   : > { %p717_p1 = scmp.ne.s32.totalorder %s1033_s19, %s716_s15  ;;  %p724_p5 = scmp.lt.s32.totalorder %s1033_s19, %s1033_s19 }
  0x49   : > { %p725_p8 = scmp.lt.s32.totalorder %s723_s0, %s716_s15 }
  0x4a   : > { %p719_p2 = pnand %p717_p1, %p1053_p11 }
  0x4b   : > { %p726_p10 = por %p725_p8, %p724_p5 }
  0x4c   : > { %p720_p3 = pneg %p719_p2 }
  0x4e   : > { %p727_p12 = pnand %p726_p10, %p720_p3 }
  0x50   : > { %730 = shalt.err (!%p727_p12)
}
  0x51   : > { %586 = dma.hbm_to_vmem [thread:$0]  (!%p1037_p9), %s1336_s5, 16, %s1033_s19, [#allocation13]  }
  0x52   : > { %s1337_s4 = sld [smem:[#allocation28_spill]] }
  0x58   : > { %s731_s26 = scalar_lea.hbm %s1337_s4, 32 }
  0x59   : > { %p732_p13 = scmp.ne.s32.totalorder %s1337_s4, %s731_s26  ;;  %p738_p6 = scmp.lt.u32.totalorder %s731_s26, %s1337_s4 }
  0x5b   : > { %p734_p7 = pnand %p732_p13, %p1053_p11 }
  0x5d   : > { %p735_p4 = pneg %p734_p7 }
  0x5f   : > { %p740_p0 = pnand %p738_p6, %p735_p4 }
  0x61   : > { %743 = shalt.err (!%p740_p0)
}
  0x62   : > { %s744_s19 = scalar_lea.vmem %s1041_s21, 32  ;;  %p752_p5 = scmp.lt.s32.totalorder %s1041_s21, %s1041_s21 }
  0x63   : > { %p745_p1 = scmp.ne.s32.totalorder %s1041_s21, %s744_s19  ;;  %p753_p8 = scmp.lt.s32.totalorder %s744_s19, %s744_s19 }
  0x65   : > { %p747_p2 = pnand %p745_p1, %p1053_p11  ;;  %p754_p10 = por %p753_p8, %p752_p5 }
  0x67   : > { %p748_p3 = pneg %p747_p2 }
  0x69   : > { %p755_p12 = pnand %p754_p10, %p748_p3 }
  0x6b   : > { %758 = shalt.err (!%p755_p12)
}
  0x6c   : > { %583 = dma.hbm_to_vmem [thread:$0]  (!%p1037_p9), %s1337_s4, 32, %s1041_s21, [#allocation10]  }
  0x6d   : > { %s759_s18 = scalar_lea.hbm %s1323_s6, 16 }
  0x6e   : > { %p760_p13 = scmp.ne.s32.totalorder %s1323_s6, %s759_s18  ;;  %p766_p6 = scmp.lt.u32.totalorder %s759_s18, %s1323_s6 }
  0x70   : > { %p762_p7 = pnand %p760_p13, %p1053_p11 }
  0x72   : > { %p763_p4 = pneg %p762_p7 }
  0x74   : > { %p768_p0 = pnand %p766_p6, %p763_p4 }
  0x76   : > { %771 = shalt.err (!%p768_p0)
}
  0x77   : > { %s772_s27 = scalar_lea.vmem %s217_s24, 16  ;;  %s779_s21 = scalar_lea.vmem %s217_s24, 32 }
  0x78   : > { %p773_p1 = scmp.ne.s32.totalorder %s217_s24, %s772_s27  ;;  %p780_p5 = scmp.lt.s32.totalorder %s217_s24, %s217_s24 }
  0x79   : > { %p781_p8 = scmp.lt.s32.totalorder %s779_s21, %s772_s27 }
  0x7a   : > { %p775_p2 = pnand %p773_p1, %p1053_p11 }
  0x7b   : > { %p782_p10 = por %p781_p8, %p780_p5 }
  0x7c   : > { %p776_p3 = pneg %p775_p2 }
  0x7e   : > { %p783_p12 = pnand %p782_p10, %p776_p3 }
  0x80   : > { %786 = shalt.err (!%p783_p12)
}
  0x81   : > { %589 = dma.hbm_to_vmem [thread:$0]  (!%p1037_p9), %s1323_s6, 16, %s217_s24, [#allocation13]  }
  0x82   : > { %s530_s30 = sadd.s32 4294967294, %s927_s14   ;;  %s1145_s22 = sadd.s32 1, %s927_s14  }
  0x83   : > { %s33_s8 = ssub.s32 %s927_s14, %s1145_s22  ;;  %s36_s19 = sadd.s32 1, %s923_s13 }
  0x84   : > { %p34_p11 = scmp.eq.s32.totalorder %s33_s8, 0  ;;  %p43_p13 = scmp.ne.s32.totalorder %s923_s13, %s919_s12 }
  0x85   : > { %p44_p7 = scmp.eq.s32.totalorder %s927_s14, 0  ;;  %p49_p4 = scmp.ne.s32.totalorder %s919_s12, %s915_s11 }
  0x86   : > { %s1156_s9 = scalar_select %p34_p11, %s923_s13, %s36_s19  }
  0x87   : > { %p1158_p6 = por %p44_p7, %p43_p13  ;;  %p1339_p0 = scmp.eq.s32.totalorder %s1019_s16, 0 }
  0x88   : > { %p157_p1 = scmp.eq.s32.totalorder %s1019_s16, 1  ;;  %p163_p2 = scmp.eq.s32.totalorder %s530_s30, 1 }
  0x89   : > { %p1164_p9 = por %p1339_p0, %p49_p4  ;;  %p602_p3 = scmp.lt.s32.totalorder %s927_s14, 2 }
  0x8a   : > { %s227_s15 = sand.u32 1, %s923_s13   ;;  %p1171_p5 = por %p157_p1, %p43_p13 }
  0x8b   : > { %p1175_p8 = por %p163_p2, %p49_p4  ;;  %s537_s20 = sshll.u32 %s227_s15, 3 }
  0x8c   : > { %s1341_s0 = scalar_select %p1171_p5, 1, 0 }
  0x8d   : > { %s1342_s18 = scalar_select %p1175_p8, 1, 0 }
  0x8e   : > { %s538_s23 = sshll.u32 %s927_s14, 7  ;;  %s1343_s1 = sld [smem:[#allocation26_spill]] }
  0x8f   : > { %s231_s21 = scalar_lea.vmem [#allocation6], %s537_s20  ;;  %p1189_p10 = pnand %p602_p3, %p1158_p6 }
  0x90   : > { %s238_s28 = sshll.u32 %s231_s21, 4  ;;  %s228_s30 = scalar_lea.sflag [#allocation7], %s227_s15  ;;  %s1185_s28 = int_to_ptr.vmem [resolvable:$true] %s238_s28 }
  0x91   : > { %p789_p11 = pneg %p1189_p10 }
  0x94   : > { %s1183_s27 = scalar_lea.hbm %s1343_s1, %s538_s23  ;;  %s792_s23 = scalar_lea.hbm %s1343_s1, 256 }
  0x95   : > { %s787_s8 = scalar_lea.hbm %s1183_s27, 128  ;;  %p793_p4 = scmp.lt.u32.totalorder %s1183_s27, %s1343_s1 }
  0x96   : > { %p788_p12 = scmp.ne.s32.totalorder %s1183_s27, %s787_s8  ;;  %p794_p6 = scmp.lt.u32.totalorder %s792_s23, %s787_s8 }
  0x97   : > { %p796_p1 = scmp.lt.u32.totalorder %s787_s8, %s1183_s27 }
  0x98   : > { %p790_p13 = pnand %p789_p11, %p788_p12  ;;  %p795_p0 = por %p794_p6, %p793_p4 }
  0x9a   : > { %p791_p7 = pneg %p790_p13  ;;  %p797_p2 = por %p796_p1, %p795_p0 }
  0x9c   : > { %p798_p3 = pnand %p797_p2, %p791_p7 }
  0x9e   : > { %801 = shalt.err (!%p798_p3)
}
  0x9f   : > { %s802_s15 = scalar_lea.vmem %s1185_s28, 128  ;;  %s942_s26 = smov [#allocation6]  }
  0xa0   : > { %p803_p12 = scmp.ne.s32.totalorder %s1185_s28, %s802_s15  ;;  %s807_s21 = sshll.u32 %s942_s26, 4  ;;  %s808_s21 = int_to_ptr.vmem [resolvable:$false] %s807_s21 }
  0xa1   : > { %s809_s19 = scalar_lea.vmem %s808_s21, 256  ;;  %p810_p5 = scmp.lt.s32.totalorder %s1185_s28, %s808_s21 }
  0xa2   : > { %p805_p13 = pnand %p803_p12, %p789_p11  ;;  %p811_p4 = scmp.lt.s32.totalorder %s809_s19, %s802_s15 }
  0xa4   : > { %p806_p8 = pneg %p805_p13  ;;  %p812_p6 = por %p811_p4, %p810_p5 }
  0xa6   : > { %p813_p0 = pnand %p812_p6, %p806_p8 }
  0xa8   : > { %816 = shalt.err (!%p813_p0)
}
  0xa9   : > { %593 = dma.hbm_to_vmem [thread:$0]  (!%p1189_p10), %s1183_s27, 128, %s1185_s28, %s228_s30  }
  0xaa   : > { %p1345_p7 = scmp.ne.s32.totalorder %s1332_s17, 0 }
  0xab   : > { %s1221_s8 = sand.u32 (!%p1345_p7), 1, %s919_s12  }
  0xac   : > { %247 = sbr.rel (%p1345_p7) target bundleno = 697 (0x2b9), region = 40  ;;  %s540_s20 = sshll.u32 (!%p1345_p7), %s1221_s8, 3 }
  0xad   : > { %s250_s23 = scalar_lea.sflag (!%p1345_p7), [#allocation7], %s1221_s8  ;;  %s1225_s10 = scalar_lea.vmem (!%p1345_p7), [#allocation6], %s540_s20 }
  0xb3   : > { %896 = dma.done.wait (%p1164_p9), %s250_s23, 128  }
  0xb4   : > { %898 = vsyncadd (%p1164_p9), %s250_s23, 4294967168  ;;  %p1346_p5 = scmp.eq.s32.totalorder %s1019_s16, 0 }
  0xb6   : > { %900 = dma.done.wait (%p1346_p5), [#allocation10], 160   ;;  %p1347_p8 = pmov %p1346_p5 }
  0xb7   : > { %p1348_p10 = pmov %p1346_p5 }
  0xb8   : > { %902 = vsyncadd (%p1347_p8), [#allocation10], 4294967136 }
  0xb9   : > { %904 = dma.done.wait (%p1348_p10), [#allocation13], 32   ;;  %p1349_p11 = pmov %p1346_p5 }
  0xba   : > { %s546_s17 = sshll.u32 %s1019_s16, 3  ;;  %s1240_s27 = scalar_lea.vmem [#allocation15], %s540_s20 }
  0xbb   : > { %906 = vsyncadd (%p1349_p11), [#allocation13], 4294967264  ;;  %s1242_s28 = smov 0  }
  0xbc LB: >> { %s303_s24 = sadd.s32 %s931_s28, %s546_s17  ;;  %s307_s30 = scalar_lea.vmem [#allocation2], %s931_s28  ;;  %s931_s28 = sphi %s1242_s28, %s302_s28  }
  0xbd   : >> { %s304_s29 = sld [smem:[#allocation5 + %s303_s24]]  ;;  %s315_s25 = sshll.u32 %s307_s30, 4  ;;  %s316_s25 = int_to_ptr.vmem [resolvable:$true] %s315_s25 }
  0xbe   : >> { %s819_s3 = scalar_lea.hbm %s1319_s2, 1024 }
  0xc3   : >> { %s547_s15 = sshll.u32 %s304_s29, 4 }
  0xc4   : >> { %s306_s19 = scalar_lea.hbm %s1319_s2, %s547_s15 }
  0xc5   : >> { %s817_s20 = scalar_lea.hbm %s306_s19, 16  ;;  %p820_p1 = scmp.lt.u32.totalorder %s306_s19, %s1319_s2 }
  0xc6   : >> { %p818_p9 = scmp.ne.s32.totalorder %s306_s19, %s817_s20  ;;  %p821_p2 = scmp.lt.u32.totalorder %s819_s3, %s817_s20 }
  0xc7   : >> { %p823_p12 = scmp.lt.u32.totalorder %s817_s20, %s306_s19 }
  0xc8   : >> { %p822_p3 = por %p821_p2, %p820_p1 }
  0xca   : >> { %p824_p13 = por %p823_p12, %p822_p3 }
  0xcc   : >> { %p825_p4 = pnand %p824_p13, %p818_p9 }
  0xce   : >> { %828 = shalt.err (!%p825_p4)  }
  0xcf   : >> { %s829_s24 = scalar_lea.vmem %s316_s25, 16  ;;  %s943_s29 = smov [#allocation2]  }
  0xd0   : >> { %p830_p6 = scmp.ne.s32.totalorder %s316_s25, %s829_s24  ;;  %s831_s30 = sshll.u32 %s943_s29, 4  ;;  %s832_s30 = int_to_ptr.vmem [resolvable:$false] %s831_s30 }
  0xd1   : >> { %s833_s15 = scalar_lea.vmem %s832_s30, 128  ;;  %p834_p0 = scmp.lt.s32.totalorder %s316_s25, %s832_s30 }
  0xd2   : >> { %p835_p7 = scmp.lt.s32.totalorder %s833_s15, %s829_s24 }
  0xd4   : >> { %p836_p5 = por %p835_p7, %p834_p0 }
  0xd6   : >> { %p837_p8 = pnand %p836_p5, %p830_p6 }
  0xd8   : >> { %840 = shalt.err (!%p837_p8)  }
  0xd9   : >> { %318 = dma.hbm_to_vmem [thread:$0]  %s306_s19, 16, %s316_s25, [#allocation3] }
  0xda   : >> { %s302_s28 = sadd.s32 1, %s931_s28  }
  0xdb   : >> { %p299_p10 = scmp.ge.s32.totalorder %s302_s28, 8  }
  0xdc   : > { %s933_s1 = smov (%p299_p10), 0  }
  0xdd   : > { %301 = sbr.rel (!%p299_p10) target bundleno = 188 (0xbc), region = 121 }
  0xe4 LB: >> { %907 = dma.done.wait [#allocation3], 16  ;;  %s935_s1 = sphi %s933_s1, %s324_s1  }
  0xe5   : >> { %908 = vsyncadd [#allocation3], 4294967280  ;;  %s324_s1 = sadd.s32 1, %s935_s1  }
  0xe6   : >> { %p321_p11 = scmp.ge.s32.totalorder %s324_s1, 8  }
  0xe7   : > { %v331_v0 = vld [vmem:[%s1225_s10] sm:$0xff] (%p321_p11)  ;;  %v944_v1 = vmov (%p321_p11), 0   ;;  %v328_v5 = vld [vmem:[#allocation2] sm:$0xff] (%p321_p11)  ;;  %v329_v6 = vld [vmem:[#allocation9] sm:$0xff] (%p321_p11)  ;;  %vm357_vm4 = vcmask (%p321_p11), 261120   ;;  %s553_s3 = sshll.u32 (%p321_p11), %s1019_s16, 7 }
  0xe8   : > { %323 = sbr.rel (!%p321_p11) target bundleno = 228 (0xe4), region = 132  ;;  %662 = vset.pattern.permute.xlu0 (%p321_p11), %v944_v1  ;;  %vm333_vm0 = vcmp.eq.s32.totalorder (%p321_p11), %v331_v0, 0  ;;  %vm345_vm1 = vcmp.eq.s32.totalorder (%p321_p11), %v331_v0, 1  ;;  %v548_v7 = vld [vmem:[#allocation11] ss:$0 sm:$0xff] (%p321_p11)  ;;  %v330_v9 = vadd.f32 (%p321_p11), %v329_v6, %v328_v5  ;;  %s403_s4 = sshll.u32 (%p321_p11), %s1240_s27, 4  ;;  %s1273_s4 = int_to_ptr.vmem [resolvable:$true] %s403_s4 }
  0xe9   : > { %v334_v2 = vsel (%p321_p11), %vm333_vm0, 1, %v944_v1  ;;  %v346_v3 = vsel (%p321_p11), %vm345_vm1, 1, %v944_v1  ;;  %v549_v8 = vld [vmem:[#allocation11 + $0x1] ss:$0 sm:$0xff] (%p321_p11)  ;;  %v550_v24 = vld [vmem:[#allocation12] ss:$0 sm:$0xff] (%p321_p11)  ;;  %s1271_s17 = scalar_lea.hbm (%p321_p11), %s1324_s7, %s553_s3 }
  0xea   : > { %336 = vperm.xlu0 (%p321_p11), %662, %v334_v2   ;;  %v551_v26 = vld [vmem:[#allocation14] ss:$0 sm:$0xff] (%p321_p11)  ;;  %s390_s28 = scalar_lea.sflag (%p321_p11), [#allocation8], %s1221_s8  ;;  %s841_s25 = scalar_lea.vmem (%p321_p11), %s1273_s4, 128 }
  0xeb   : > { %p842_p9 = scmp.ne.s32.totalorder (%p321_p11), %s1273_s4, %s841_s25  ;;  %p1350_p1 = scmp.ne.s32.totalorder (%p321_p11), %s1341_s0, 0 }
  0xec   : > { %s945_s16 = smov (%p321_p11), [#allocation15]  }
  0xed   : > { %p843_p2 = pnand (%p321_p11), %p842_p9, %p1350_p1  ;;  %s845_s26 = sshll.u32 (%p321_p11), %s945_s16, 4  ;;  %s846_s26 = int_to_ptr.vmem [resolvable:$false] %s845_s26 }
  0xee   : > { %348 = vperm.xlu0 (%p321_p11), %662, %v346_v3   ;;  %s847_s21 = scalar_lea.vmem (%p321_p11), %s846_s26, 256  ;;  %p848_p12 = scmp.lt.s32.totalorder (%p321_p11), %s1273_s4, %s846_s26 }
  0xef   : > { %p844_p3 = pneg %p843_p2  ;;  %p849_p13 = scmp.lt.s32.totalorder %s847_s21, %s841_s25 }
  0xf1   : > { %p850_p4 = por %p849_p13, %p848_p12 }
  0xf3   : > { %p851_p6 = pnand %p850_p4, %p844_p3 }
 0x169   : > { %v337_v4 = vpop.permute.xlu0 %336 }
 0x16a   : > { %vm338_vm2 = vcmp.eq.s32.totalorder %v337_v4, 1 }
 0x16b   : > { %v343_v11 = vsel %vm338_vm2, %v548_v7, 0.0 }
 0x16d   : > { %v349_v10 = vpop.permute.xlu0 %348 }
 0x16e   : > { %vm350_vm3 = vcmp.eq.s32.totalorder %v349_v10, 1 }
 0x16f   : > { %v355_v12 = vsel %vm350_vm3, %v549_v8, %v343_v11 }
 0x170   : > { %v356_v13 = vadd.f32 %v355_v12, %v330_v9 }
 0x172   : > { %v358_v14 = vsel %vm357_vm4, %v356_v13, 0.0 }
 0x173   : > { %359 = vadd.xlane.f32.xlu1 %v358_v14 }
 0x200   : > { %v360_v15 = vpop.xlane.xlu1 %359 }
 0x201   : > { %v362_v16 = vmul.f32 0.03125, %v360_v15 }
 0x203   : > { %v363_v17 = vsub.f32 %v356_v13, %v362_v16 }
 0x205   : > { %v364_v18 = vmul.f32 %v363_v17, %v363_v17 }
 0x207   : > { %v365_v19 = vsel %vm357_vm4, %v364_v18, 0.0 }
 0x208   : > { %366 = vadd.xlane.f32.xlu1 %v365_v19 }
 0x295   : > { %v367_v20 = vpop.xlane.xlu1 %366 }
 0x296   : > { %v368_v21 = vmul.f32 0.03125, %v367_v20 }
 0x298   : > { %v369_v22 = vadd.f32 1e-12, %v368_v21 }
 0x29a   : > { %663 = vrsqrt.f32 %v369_v22 }
 0x2a4   : > { %v664_v23 = vpop.eup %663 }
 0x2a5   : > { %v371_v25 = vmul.f32 %v664_v23, %v363_v17 }
 0x2a7   : > { %v379_v27 = vmul.f32 %v550_v24, %v371_v25 }
 0x2a9   : > { %v387_v28 = vadd.f32 %v551_v26, %v379_v27 }
 0x2ab   : > { %388 = vst.msk [vmem:[%s1240_s27] sm:$0xff] %vm357_vm4, %v387_v28 }
 0x2ac   : > { %854 = shalt.err (!%p851_p6)
}
 0x2ad   : > { %s855_s8 = scalar_lea.hbm %s1271_s17, 128  ;;  %s859_s20 = scalar_lea.hbm %s1324_s7, 256 }
 0x2ae   : > { %p856_p0 = scmp.ne.s32.totalorder %s1271_s17, %s855_s8  ;;  %p860_p8 = scmp.lt.u32.totalorder %s1271_s17, %s1324_s7 }
 0x2af   : > { %p861_p10 = scmp.lt.u32.totalorder %s859_s20, %s855_s8  ;;  %p863_p9 = scmp.lt.u32.totalorder %s855_s8, %s1271_s17 }
 0x2b0   : > { %p857_p7 = pnand %p856_p0, %p1350_p1 }
 0x2b1   : > { %p862_p11 = por %p861_p10, %p860_p8 }
 0x2b2   : > { %p858_p5 = pneg %p857_p7 }
 0x2b3   : > { %p864_p2 = por %p863_p9, %p862_p11 }
 0x2b5   : > { %p865_p3 = pnand %p864_p2, %p858_p5 }
 0x2b7   : > { %868 = shalt.err (!%p865_p3)
}
 0x2b8   : > { %575 = dma.vmem_to_hbm [thread:$0]  (%p1350_p1), %s1273_s4, 128, %s1271_s17, %s390_s28  }
 0x2b9 PF: > { %s415_s29 = sand.u32 1, %s915_s11   ;;  %p1351_p12 = scmp.ne.s32.totalorder %s1342_s18, 0 }
 0x2ba   : > { %p1352_p13 = scmp.ge.s32.totalorder %s927_s14, 2  ;;  %s416_s30 = scalar_lea.sflag [#allocation8], %s415_s29 }
 0x2bc   : > { %p595_p4 = pnand %p1352_p13, %p1351_p12 }
 0x2be   : > { %910 = dma.done.wait (!%p595_p4), %s416_s30, 128  }
 0x2bf   : > { %912 = vsyncadd (!%p595_p4), %s416_s30, 4294967168  ;;  %p26_p6 = scmp.ge.s32.totalorder %s1145_s22, 4   ;;  %s1353_s11 = smov %s919_s12 }
 0x2c0   : > { %s1354_s12 = smov %s923_s13  ;;  %s1355_s13 = smov %s1156_s9 }
 0x2c1   : > { %s1356_s14 = smov %s1145_s22  ;;  %28 = sbr.rel (!%p26_p6) target bundleno = 20 (0x14), region = 143 }
 0x2c8   :  { %421 = vsyncpa [#allocation7], 1 }
 0x2c9   :  { %423 = vsyncpa [#allocation7 + $0x1], 1 }
 0x2ca   :  { %424 = vsyncpa [#allocation10], 1 }
 0x2cb   :  { %425 = vsyncpa [#allocation13], 1 }
 0x2cc   :  { %426 = vsyncpa [#allocation8], 1 }
 0x2cd   :  { %428 = vsyncpa [#allocation8 + $0x1], 1 }
 0x2ce   :  { %429 = vsyncmov [#allocation3] }
 0x2d1   :  { %s430_s14 = vpop.sfrf %429 }
 0x2d2   :  { %p556_p1 = scmp.ne.s32.totalorder %s430_s14, 0 }
 0x2d4   :  { %434 = shalt.err (%p556_p1)  }

</bundles_post_ra>
